<compile_context>
chip_gen: v5e
topology: v5e:2x2
jax: 0.10.0
libtpu: 0.0.40
codegen_flags: <defaults>
</compile_context>

<pallas_src>
import math

import jax
import jax.numpy as jnp
import numpy as np
from jax.experimental import pallas as pl
from jax.experimental.pallas import tpu as pltpu


# ----------------------------- Pallas kernel ------------------------------- #

def _conv_lora_kernel(x_ref, w_ref, b_ref, out_ref):
    """One batch element per grid step.

    x_ref:   (1, H, W*C)     NHWC image with (W, C) flattened to the lane dim
    w_ref:   (K, W*C, OW*O)  kw-folded effective (LoRA-fused) weight, resident
    b_ref:   (1, OW*O)       bias tiled over output columns
    out_ref: (1, OH, OW*O)   lane-dense output rows (no padding, no slicing)
    """
    kk = w_ref.shape[0]          # kernel height K (static)
    oh = out_ref.shape[1]        # output rows OH (static)

    x = x_ref[0]                                           # (H, W*C)
    acc = jnp.zeros(out_ref.shape[1:], jnp.float32)        # (OH, OW*O)
    # In-kernel im2col: K sublane-shifted views of the image, each matmul'd
    # against the kw-folded weight slice (all operands already in VMEM).  The
    # kw shifts are folded into structural zeros of w_ref, so no lane shuffles
    # are needed and both dot operands stay 2-D (robust MXU lowering).
    for kh in range(kk):                                   # static unroll
        acc += jnp.dot(x[kh:kh + oh, :], w_ref[kh],
                       preferred_element_type=jnp.float32)
    out_ref[0] = acc + b_ref[...]                          # bias epilogue


# ------------------------------ JAX wrapper -------------------------------- #

def conv_lora_forward(x, conv_w, conv_b, lora_A, lora_B, scaling,
                      *, use_bf16=False):
    """ConvLoRA.forward (r>0, not merged) for a default nn.Conv2d."""
    N, C, H, W = x.shape
    O, Cg, K, K2 = conv_w.shape
    assert K == K2 and Cg == C                   # groups == 1
    OH, OW = H - K + 1, W - K + 1                # stride=1, padding=0

    compute_dtype = jnp.bfloat16 if use_bf16 else jnp.float32

    # ---- effective weight, computed once in the wrapper (tiny) --------------
    # torch: conv.weight + (lora_B @ lora_A).view(conv.weight.shape) * scaling
    delta = (lora_B @ lora_A).reshape(O, C, K, K)
    w_eff = conv_w + scaling * delta                          # (O, C, K, K)

    # ---- lower the conv weight into a kw-folded ("Toeplitz") GEMM weight ----
    #   w_toe[kh, w*C + c, ow*O + o] = w_eff[o, c, kh, w - ow]  (0 <= w-ow < K)
    # so that  out[oh, ow, o] = sum_kh  x_rows[oh+kh, :] @ w_toe[kh]  + bias.
    w_r = jnp.transpose(w_eff, (2, 3, 1, 0))                  # (K, K, C, O)
    sel = (jnp.arange(W)[None, :, None]
           == jnp.arange(K)[:, None, None] + jnp.arange(OW)[None, None, :]
           ).astype(w_r.dtype)                                # (K(kw), W, OW)
    w_toe = jnp.einsum('kwv,hkco->hwcvo', sel, w_r)           # (K, W, C, OW, O)
    w_toe = w_toe.reshape(K, W * C, OW * O).astype(compute_dtype)
    bias2d = jnp.tile(conv_b.astype(jnp.float32), (OW,)).reshape(1, OW * O)

    # ---- NHWC input with (W, C) flattened to the lane dim -------------------
    x_rows = (jnp.transpose(x, (0, 2, 3, 1))
              .reshape(N, H, W * C).astype(compute_dtype))

    out3d = pl.pallas_call(
        _conv_lora_kernel,
        out_shape=jax.ShapeDtypeStruct((N, OH, OW * O), jnp.float32),
        grid_spec=pltpu.PrefetchScalarGridSpec(
            num_scalar_prefetch=0,
            grid=(N,),                                        # >=2 steps: both
            in_specs=[                                        # v7x TCs get work
                pl.BlockSpec((1, H, W * C), lambda b: (b, 0, 0)),
                pl.BlockSpec((K, W * C, OW * O), lambda b: (0, 0, 0)),
                pl.BlockSpec((1, OW * O), lambda b: (0, 0)),
            ],
            out_specs=pl.BlockSpec((1, OH, OW * O), lambda b: (b, 0, 0)),
        ),
        compiler_params=pltpu.CompilerParams(
            dimension_semantics=("parallel",),
            vmem_limit_bytes=32 * 1024 * 1024),
    )(x_rows, w_toe, bias2d)

    # Restore PyTorch's NCHW output layout (model-boundary cost; see TODO).
    out = out3d.reshape(N, OH, OW, O).transpose(0, 3, 1, 2)
    return out


# --------------------------------- main ------------------------------------ #

if __name__ == "__main__":
    key = jax.random.PRNGKey(0)
    k1, k2, k3, k4, k5 = jax.random.split(key, 5)

    # ConvLoRA(nn.Conv2d, in=4, out=8, kernel_size=3, r=2, lora_alpha=4)
    N, C, H, W = 2, 4, 16, 16
    O, K, r, lora_alpha = 8, 3, 2, 4
    scaling = lora_alpha / r

    x = jax.random.normal(k1, (N, C, H, W), jnp.float32)

    # Deterministic parameter init (shapes follow the module's __init__):
    fan_in = C * K * K
    bound = 1.0 / math.sqrt(fan_in)
    conv_w = jax.random.uniform(k2, (O, C, K, K), jnp.float32, -bound, bound)
    conv_b = jax.random.uniform(k3, (O,), jnp.float32, -bound, bound)

    a_bound = 1.0 / math.sqrt(C * K)   # kaiming_uniform(a=sqrt(5)) bound
    lora_A = jax.random.uniform(k4, (r * K, C * K), jnp.float32,
                                -a_bound, a_bound)
    # The module zero-inits lora_B; use small nonzero values so the LoRA delta
    # path is actually exercised numerically.
    lora_B = 0.1 * jax.random.normal(k5, (O * K, r * K), jnp.float32)

    out = conv_lora_forward(x, conv_w, conv_b, lora_A, lora_B, scaling)
    out = jax.block_until_ready(out)

    # Pure-JAX reference of the exact PyTorch forward semantics.
    w_eff_ref = conv_w + (lora_B @ lora_A).reshape(conv_w.shape) * scaling
    ref = jax.lax.conv_general_dilated(
        x, w_eff_ref, window_strides=(1, 1), padding="VALID",
        dimension_numbers=("NCHW", "OIHW", "NCHW"),
    ) + conv_b[None, :, None, None]

    assert out.shape == (N, O, H - K + 1, W - K + 1)
    assert np.allclose(np.asarray(out), np.asarray(ref), atol=1e-4, rtol=1e-4)
    print("KERNEL_OK")
</pallas_src>

<mosaic_0001>
module attributes {stable_mosaic.version = 11 : i64} {
  func.func @_conv_lora_kernel(%arg0: i32, %arg1: memref<1x16x64xf32, #tpu.memory_space<vmem>>, %arg2: memref<3x64x112xf32, #tpu.memory_space<vmem>>, %arg3: memref<1x112xf32, #tpu.memory_space<vmem>>, %arg4: memref<1x14x112xf32, #tpu.memory_space<vmem>>) attributes {dimension_semantics = [#tpu.dimension_semantics<parallel>], iteration_bounds = array<i64: 2>, scalar_prefetch = 0 : i64, scratch_operands = 0 : i64, tpu.core_type = #tpu.core_type<tc>, window_params = [{transform_indices = @transform_0, window_bounds = array<i64: 1, 16, 64>}, {pipeline_mode = #tpu.pipeline_mode<synchronous>, transform_indices = @transform_1, window_bounds = array<i64: 3, 64, 112>}, {pipeline_mode = #tpu.pipeline_mode<synchronous>, transform_indices = @transform_2, window_bounds = array<i64: 1, 112>}, {transform_indices = @transform_3, window_bounds = array<i64: 1, 14, 112>}]} {
    %c0 = arith.constant 0 : index
    %c0_0 = arith.constant 0 : index
    %c0_1 = arith.constant 0 : index
    %0 = vector.load %arg1[%c0, %c0_0, %c0_1] : memref<1x16x64xf32, #tpu.memory_space<vmem>>, vector<1x16x64xf32>
    %1 = vector.shape_cast %0 : vector<1x16x64xf32> to vector<16x64xf32>
    %cst = arith.constant 0.000000e+00 : f32
    %2 = vector.broadcast %cst : f32 to vector<14x112xf32>
    %3 = vector.extract_strided_slice %1 {offsets = [0, 0], sizes = [14, 64], strides = [1, 1]} : vector<16x64xf32> to vector<14x64xf32>
    %c0_2 = arith.constant 0 : index
    %c0_3 = arith.constant 0 : index
    %c0_4 = arith.constant 0 : index
    %4 = vector.load %arg2[%c0_2, %c0_3, %c0_4] : memref<3x64x112xf32, #tpu.memory_space<vmem>>, vector<1x64x112xf32>
    %5 = vector.shape_cast %4 : vector<1x64x112xf32> to vector<64x112xf32>
    %cst_5 = arith.constant dense<0.000000e+00> : vector<14x112xf32>
    %6 = tpu.matmul %3, %5, %cst_5 {dimension_numbers = #tpu.dot_dimension_numbers<[1], [0], [0], [1], [0, 0, 1, 1], [], []>} : vector<14x64xf32>, vector<64x112xf32>, vector<14x112xf32> -> vector<14x112xf32>
    %7 = arith.addf %2, %6 : vector<14x112xf32>
    %8 = vector.extract_strided_slice %1 {offsets = [1, 0], sizes = [14, 64], strides = [1, 1]} : vector<16x64xf32> to vector<14x64xf32>
    %c1 = arith.constant 1 : index
    %c0_6 = arith.constant 0 : index
    %c0_7 = arith.constant 0 : index
    %9 = vector.load %arg2[%c1, %c0_6, %c0_7] : memref<3x64x112xf32, #tpu.memory_space<vmem>>, vector<1x64x112xf32>
    %10 = vector.shape_cast %9 : vector<1x64x112xf32> to vector<64x112xf32>
    %cst_8 = arith.constant dense<0.000000e+00> : vector<14x112xf32>
    %11 = tpu.matmul %8, %10, %cst_8 {dimension_numbers = #tpu.dot_dimension_numbers<[1], [0], [0], [1], [0, 0, 1, 1], [], []>} : vector<14x64xf32>, vector<64x112xf32>, vector<14x112xf32> -> vector<14x112xf32>
    %12 = arith.addf %7, %11 : vector<14x112xf32>
    %13 = vector.extract_strided_slice %1 {offsets = [2, 0], sizes = [14, 64], strides = [1, 1]} : vector<16x64xf32> to vector<14x64xf32>
    %c2 = arith.constant 2 : index
    %c0_9 = arith.constant 0 : index
    %c0_10 = arith.constant 0 : index
    %14 = vector.load %arg2[%c2, %c0_9, %c0_10] : memref<3x64x112xf32, #tpu.memory_space<vmem>>, vector<1x64x112xf32>
    %15 = vector.shape_cast %14 : vector<1x64x112xf32> to vector<64x112xf32>
    %cst_11 = arith.constant dense<0.000000e+00> : vector<14x112xf32>
    %16 = tpu.matmul %13, %15, %cst_11 {dimension_numbers = #tpu.dot_dimension_numbers<[1], [0], [0], [1], [0, 0, 1, 1], [], []>} : vector<14x64xf32>, vector<64x112xf32>, vector<14x112xf32> -> vector<14x112xf32>
    %17 = arith.addf %12, %16 : vector<14x112xf32>
    %c0_12 = arith.constant 0 : index
    %c0_13 = arith.constant 0 : index
    %18 = vector.load %arg3[%c0_12, %c0_13] : memref<1x112xf32, #tpu.memory_space<vmem>>, vector<1x112xf32>
    %19 = vector.broadcast %18 : vector<1x112xf32> to vector<14x112xf32>
    %20 = arith.addf %17, %19 : vector<14x112xf32>
    %c0_14 = arith.constant 0 : index
    %c0_15 = arith.constant 0 : index
    %c0_16 = arith.constant 0 : index
    %21 = vector.load %arg4[%c0_14, %c0_15, %c0_16] : memref<1x14x112xf32, #tpu.memory_space<vmem>>, vector<1x14x112xf32>
    %22 = vector.shape_cast %21 : vector<1x14x112xf32> to vector<14x112xf32>
    %23 = vector.shape_cast %20 : vector<14x112xf32> to vector<1x14x112xf32>
    tpu.vector_store %arg4[%c0_14, %c0_15, %c0_16], %23 {strides = array<i32>} : memref<1x14x112xf32, #tpu.memory_space<vmem>>, vector<1x14x112xf32>,
    return
  }
  func.func @transform_0(%arg0: i32) -> (i32, i32, i32) {
    %c0_i32 = arith.constant 0 : i32
    %c0_i32_0 = arith.constant 0 : i32
    %c0_i32_1 = arith.constant 0 : i32
    return %arg0, %c0_i32, %c0_i32_0 : i32, i32, i32
  }
  func.func @transform_1(%arg0: i32) -> (i32, i32, i32) {
    %c0_i32 = arith.constant 0 : i32
    %c0_i32_0 = arith.constant 0 : i32
    %c0_i32_1 = arith.constant 0 : i32
    %c0_i32_2 = arith.constant 0 : i32
    return %c0_i32, %c0_i32_0, %c0_i32_1 : i32, i32, i32
  }
  func.func @transform_2(%arg0: i32) -> (i32, i32) {
    %c0_i32 = arith.constant 0 : i32
    %c0_i32_0 = arith.constant 0 : i32
    %c0_i32_1 = arith.constant 0 : i32
    return %c0_i32, %c0_i32_0 : i32, i32
  }
  func.func @transform_3(%arg0: i32) -> (i32, i32, i32) {
    %c0_i32 = arith.constant 0 : i32
    %c0_i32_0 = arith.constant 0 : i32
    %c0_i32_1 = arith.constant 0 : i32
    return %arg0, %c0_i32, %c0_i32_0 : i32, i32, i32
  }
}

</mosaic_0001>

<bundles_post_ra>
// kernel: tpu_custom_call.1
= control target key start
LH: loop header
LB: loop body
LE: loop exit
PB: predicated region body
PF: predicated region fallthrough
CT: control target
= control target key end

     0   :  { %8 = vsyncpa [#allocation3], 0  ;;  %s750_s0 = inlined_call_operand.hbm [shape: f32[2,16,64], index: 0, kind: input, shape index: {}]   ;;  %s751_s1 = inlined_call_operand.hbm [shape: f32[3,64,112], index: 1, kind: input, shape index: {}]   ;;  %s752_s2 = inlined_call_operand.vmem [shape: f32[1,112], index: 2, kind: input, shape index: {}]   ;;  %s753_s3 = inlined_call_operand.vmem [shape: f32[2,14,112], index: 3, kind: output, shape index: {}]  }
   0x1   :  { %10 = vsyncpa [#allocation3 + $0x1], 0 }
   0x2   :  { %11 = vsyncpa [#allocation5], 0  ;;  %s625_s12 = smov 0   ;;  %s627_s13 = smov 0  }
   0x3   :  { %s629_s14 = smov 0   ;;  %s631_s15 = smov 0  }
   0x4 LB: > { %s644_s16 = sadd.s32 4294967295, %s600_s15   ;;  %p37_p0 = scmp.ne.s32.totalorder %s592_s13, %s588_s12  ;;  %s600_s15 = sphi %s631_s15, %s760_s15   ;;  %s596_s14 = sphi %s629_s14, %s759_s14   ;;  %s592_s13 = sphi %s627_s13, %s758_s13   ;;  %s588_s12 = sphi %s625_s12, %s757_s12  }
   0x5   : > { %p38_p1 = scmp.eq.s32.totalorder %s644_s16, 0  ;;  %p420_p2 = scmp.ge.s32.totalorder %s600_s15, 1 }
   0x6   : > { %p116_p3 = scmp.lt.s32.totalorder %s600_s15, 3  ;;  %s127_s20 = sshll.u32 %s751_s1, 4  ;;  %s128_s20 = int_to_ptr.hbm [resolvable:$true] %s127_s20 }
   0x7   : > { %p652_p4 = por %p38_p1, %p37_p0  ;;  %s602_s22 = smov [#allocation4]  }
   0x8   : > { %p659_p5 = pnand %p420_p2, %p116_p3  ;;  %s129_s23 = sshll.u32 %s602_s22, 4  ;;  %s130_s23 = int_to_ptr.vmem [resolvable:$true] %s129_s23 }
   0x9   : > { %s668_s24 = sadd.s32 1, %s600_s15   ;;  %s603_s25 = smov 128  }
   0xa   : > { %p455_p6 = pneg %p659_p5  ;;  %s604_s26 = smov 8  }
   0xb   : > { %s21_s27 = ssub.s32 %s600_s15, %s668_s24  ;;  %s24_s28 = sadd.s32 1, %s596_s14 }
   0xc   : > { %p456_p7 = pnand %p455_p6, %p38_p1  ;;  %p22_p8 = scmp.eq.s32.totalorder %s21_s27, 0 }
   0xd   : > { %p31_p9 = scmp.ne.s32.totalorder %s596_s14, %s592_s13  ;;  %p32_p10 = scmp.eq.s32.totalorder %s600_s15, 0 }
   0xe   : > { %458 = dma.hbm_to_vmem [thread:$0]  (!%p456_p7), %s128_s20, 3072, %s130_s23, [#allocation5], %s603_s25, %s603_s25, %s604_s26  }
   0xf   : > { %p464_p11 = scmp.lt.s32.totalorder %s600_s15, 2  ;;  %p33_p12 = por %p32_p10, %p31_p9 }
  0x10   : > { %s681_s29 = scalar_select %p22_p8, %s596_s14, %s24_s28  }
  0x11   : > { %s146_s30 = sand.u32 1, %s596_s14   ;;  %s439_s5 = sshll.u32 %s600_s15, 4 }
  0x12   : > { %s423_s4 = sshll.u32 %s146_s30, 4  ;;  %s155_s8 = scalar_lea.hbm %s750_s0, %s439_s5 }
  0x13   : > { %s150_s9 = scalar_lea.vmem [#allocation2], %s423_s4  ;;  %s156_s11 = sshll.u32 %s155_s8, 4  ;;  %s157_s11 = int_to_ptr.hbm [resolvable:$true] %s156_s11 }
  0x14   : > { %s158_s10 = sshll.u32 %s150_s9, 4  ;;  %p688_p13 = pnand %p464_p11, %p33_p12  ;;  %s159_s10 = int_to_ptr.vmem [resolvable:$true] %s158_s10 }
  0x15   : > { %s147_s18 = scalar_lea.sflag [#allocation3], %s146_s30  ;;  %s532_s19 = sshra.s32 %s157_s11, 4  ;;  %s533_s19 = int_to_ptr.hbm [resolvable:$true] %s532_s19 }
  0x16   : > { %s534_s20 = scalar_lea.hbm %s533_s19, 16  ;;  %p536_p2 = pneg %p688_p13 }
  0x17   : > { %p535_p0 = scmp.ne.s32.totalorder %s533_s19, %s534_s20  ;;  %s539_s23 = scalar_lea.hbm %s750_s0, 32 }
  0x18   : > { %p540_p7 = scmp.lt.s32.totalorder %s533_s19, %s750_s0  ;;  %p541_p8 = scmp.lt.s32.totalorder %s539_s23, %s534_s20 }
  0x19   : > { %p537_p3 = pnand %p536_p2, %p535_p0 }
  0x1a   : > { %p542_p9 = por %p541_p8, %p540_p7 }
  0x1b   : > { %p538_p6 = pneg %p537_p3 }
  0x1d   : > { %p543_p10 = pnand %p542_p9, %p538_p6 }
  0x1f   : > { %546 = shalt.err (!%p543_p10)
}
  0x20   : > { %462 = dma.hbm_to_vmem [thread:$0]  (!%p688_p13), %s157_s11, 256, %s159_s10, %s147_s18, %s603_s25, %s603_s25, %s604_s26  }
  0x21   : > { %170 = sbr.rel (%p659_p5) target bundleno = 202 (0xca), region = 32  ;;  %s172_s30 = sand.u32 (!%p659_p5), 1, %s592_s13  }
  0x22   : > { %s708_s4 = sshll.u32 (!%p659_p5), %s172_s30, 4  ;;  %s173_s5 = scalar_lea.sflag (!%p659_p5), [#allocation3], %s172_s30 }
  0x23   : > { %s176_s6 = scalar_lea.vmem (!%p659_p5), [#allocation2], %s708_s4 }
  0x26   : > { %579 = dma.done.wait (%p652_p4), %s173_s5, 256  }
  0x27   : > { %581 = vsyncadd (%p652_p4), %s173_s5, 4294967040 }
  0x28   : > { %583 = dma.done.wait (%p38_p1), [#allocation5], 3072  }
  0x29   : > { %585 = vsyncadd (%p38_p1), [#allocation5], 4294964224  ;;  %v298_v0 = vld [vmem:[#allocation4 + $0xb8] sm:$0xff]  ;;  %v297_v1 = vld [vmem:[#allocation4 + $0xb0] sm:$0xff]  ;;  %vm299_vm0 = vcmask 1045504   ;;  %vm231_vm1 = vcmask 1046528  }
  0x2a   : > { %v228_v2 = vld [vmem:[#allocation4 + $0x78] sm:$0xff]  ;;  %315 = vmatpush.msra.mxu2 %v298_v0  ;;  %v227_v4 = vld [vmem:[#allocation4 + $0x70] sm:$0xff]  ;;  %v296_v5 = vld [vmem:[#allocation4 + $0xa8] sm:$0xff]  ;;  %vm235_vm2 = vcmask 523264   ;;  %p205_p1 = scmp.lt.s32.totalorder %s644_s16, 1  ;;  %vm338_vm3 = vcmask 916480  }
  0x2b   : > { %248 = vmatpush.msra.mxu0 %v228_v2  ;;  %v219_v3 = vld [vmem:[#allocation4 + $0x38] sm:$0xff]  ;;  %441 = vmatpush.msra.mxu3 %v228_v2  ;;  %v218_v6 = vld [vmem:[#allocation4 + $0x30] sm:$0xff]  ;;  %v226_v7 = vld [vmem:[#allocation4 + $0x68] sm:$0xff]  ;;  %vm340_vm4 = vcmask 914432  }
  0x2c   : > { %275 = vmatpush.msra.mxu1 %v219_v3  ;;  %316 = vmatpush.msra.mxu2 %v297_v1  ;;  %v217_v8 = vld [vmem:[#allocation4 + $0x28] sm:$0xff]  ;;  %v295_v9 = vld [vmem:[#allocation4 + $0xa0] sm:$0xff]  ;;  %v294_v12 = vld [vmem:[#allocation4 + $0x98] sm:$0xff]  ;;  %s762_s16 = smov (!%p205_p1, %s644_s16), 1 }
  0x2d   : > { %249 = vmatpush.msra.mxu0 %v227_v4  ;;  %442 = vmatpush.msra.mxu3 %v227_v4  ;;  %v225_v10 = vld [vmem:[#allocation4 + $0x60] sm:$0xff]  ;;  %v224_v13 = vld [vmem:[#allocation4 + $0x58] sm:$0xff]  ;;  %v293_v17 = vld [vmem:[#allocation4 + $0x90] sm:$0xff]  ;;  %s440_s17 = sshll.u32 %s762_s16, 4 }
  0x2e   : > { %276 = vmatpush.msra.mxu1 %v218_v6  ;;  %317 = vmatpush.msra.mxu2 %v296_v5  ;;  %v216_v11 = vld [vmem:[#allocation4 + $0x20] sm:$0xff]  ;;  %v215_v15 = vld [vmem:[#allocation4 + $0x18] sm:$0xff]  ;;  %v223_v18 = vld [vmem:[#allocation4 + $0x50] sm:$0xff]  ;;  %s209_s8 = scalar_lea.vmem %s753_s3, %s440_s17 }
  0x2f   : > { %250 = vmatpush.msra.mxu0 %v226_v7  ;;  %443 = vmatpush.msra.mxu3 %v226_v7  ;;  %v210_v14 = vld [vmem:[%s176_s6] sm:$0xff]  ;;  %v211_v16 = vld [vmem:[%s176_s6 + $0x8] sm:$0xff] }
  0x30   : > { %277 = vmatpush.msra.mxu1 %v217_v8  ;;  %318 = vmatpush.msra.mxu2 %v295_v9  ;;  %v214_v19 = vld [vmem:[#allocation4 + $0x10] sm:$0xff]  ;;  %v300_v20 = vrot.slane %v210_v14, 2  ;;  %v301_v21 = vrot.slane %v211_v16, 2  ;;  %v292_v22 = vld [vmem:[#allocation4 + $0x88] sm:$0xff]  ;;  %v232_v24 = vrot.slane %v210_v14, 1  ;;  %v233_v25 = vrot.slane %v211_v16, 1 }
  0x31   : > { %251 = vmatpush.msra.mxu0 %v225_v10  ;;  %444 = vmatpush.msra.mxu3 %v225_v10  ;;  %v222_v23 = vld [vmem:[#allocation4 + $0x48] sm:$0xff]  ;;  %v291_v27 = vld [vmem:[#allocation4 + $0x80] sm:$0xff] }
  0x32   : > { %278 = vmatpush.msra.mxu1 %v216_v11  ;;  %319 = vmatpush.msra.mxu2 %v294_v12  ;;  %v213_v26 = vld [vmem:[#allocation4 + $0x8] sm:$0xff]  ;;  %v221_v28 = vld [vmem:[#allocation4 + $0x40] sm:$0xff]  ;;  %v302_v29 = vsel %vm299_vm0, %v300_v20, %v301_v21  ;;  %v234_v31 = vsel %vm231_vm1, %v232_v24, %v233_v25 }
  0x33   : > { %252 = vmatpush.msra.mxu0 %v224_v13  ;;  %445 = vmatpush.msra.mxu3 %v224_v13  ;;  %v212_v30 = vld [vmem:[#allocation4] sm:$0xff] }
  0x34   : > { %279 = vmatpush.msra.mxu1 %v215_v15  ;;  %320 = vmatpush.msra.mxu2 %v293_v17  ;;  %v501_v35 = vld [vmem:[%s752_s2] ss:$0 sm:$0xff] }
  0x35   : > { %253 = vmatpush.msra.mxu0 %v223_v18  ;;  %446 = vmatpush.msra.mxu3 %v223_v18 }
  0x36   : > { %280 = vmatpush.msra.mxu1 %v214_v19  ;;  %321 = vmatpush.msra.mxu2 %v292_v22 }
  0x37   : > { %254 = vmatpush.msra.mxu0 %v222_v23  ;;  %447 = vmatpush.msra.mxu3 %v222_v23 }
  0x38   : > { %281 = vmatpush.msra.mxu1 %v213_v26  ;;  %322 = vmatpush.msra.mxu2 %v291_v27 }
  0x39   : > { %255 = vmatpush.msra.mxu0 %v221_v28  ;;  %435 = vmatmul.msk.f32.vlgmr.msra.gmra.mxu2 %vm235_vm2, %v302_v29 }
  0x3a   : > { %282 = vmatpush.msra.mxu1 %v212_v30  ;;  %431 = vmatmul.msk.f32.vlgmr.msra.gmra.mxu0 %vm235_vm2, %v234_v31 }
  0x3b   : > { %433 = vmatmul.msk.f32.vlgmr.msra.gmra.mxu1 %vm235_vm2, %v210_v14  ;;  %448 = vmatpush.msra.mxu3 %v221_v28 }
  0x3c   : > { %432 = vmatmul.msk.f32.vlgmr.msra.gmra.mxu3 %vm235_vm2, %v233_v25 }
  0x41   : > { %436 = vmatmul.msk.f32.gmra.mxu2 %vm235_vm2, %v301_v21 }
  0x43   : > { %434 = vmatmul.msk.f32.gmra.mxu1 %vm235_vm2, %v211_v16 }
  0xb7   : > { %v257_v32 = vpop.f32.mrf.mxu0 }
  0xb8   : > { %v284_v33 = vpop.f32.mrf.mxu1 }
  0xb9   : > { %v285_v34 = vadd.f32 %v284_v33, %v257_v32 }
  0xbc   : > { %v324_v36 = vpop.f32.mrf.mxu2 }
  0xbd   : > { %v330_v37 = vadd.f32 %v324_v36, %v285_v34 }
  0xbf   : > { %v336_v38 = vadd.f32 %v501_v35, %v330_v37  ;;  %v260_v39 = vpop.f32.mrf.mxu3 }
  0xc0   : > { %v287_v40 = vpop.f32.mrf.mxu1 }
  0xc1   : > { %339 = vst.msk [vmem:[%s209_s8] sm:$0xff] %vm338_vm3, %v336_v38  ;;  %v288_v41 = vadd.f32 %v287_v40, %v260_v39 }
  0xc4   : > { %v327_v42 = vpop.f32.mrf.mxu2 }
  0xc5   : > { %v331_v43 = vadd.f32 %v327_v42, %v288_v41 }
  0xc7   : > { %v337_v44 = vadd.f32 %v501_v35, %v331_v43 }
  0xc9   : > { %341 = vst.msk [vmem:[%s209_s8 + $0x8] sm:$0x3f] %vm340_vm4, %v337_v44 }
  0xca PF: > { %p14_p4 = scmp.ge.s32.totalorder %s668_s24, 4   ;;  %s757_s12 = smov %s592_s13 }
  0xcb   : > { %s758_s13 = smov %s596_s14  ;;  %s759_s14 = smov %s681_s29 }
  0xcc   : > { %s760_s15 = smov %s668_s24  ;;  %16 = sbr.rel (!%p14_p4) target bundleno = 4 (0x4), region = 78 }
  0xd1   :  { %363 = vsyncpa [#allocation3], 1 }
  0xd2   :  { %365 = vsyncpa [#allocation3 + $0x1], 1 }
  0xd3   :  { %366 = vsyncpa [#allocation5], 1 }

</bundles_post_ra>
